<compile_context>
chip_gen: v7x
topology: tpu7x:2x2x1
jax: 0.10.0
libtpu: 0.0.40
codegen_flags: <defaults>
</compile_context>

<pallas_src>
import jax
import jax.numpy as jnp
from jax.experimental import pallas as pl
from jax.experimental.pallas import tpu as pltpu


def _softplus(z):
    # PyTorch softplus semantics: beta=1, threshold=20 (identity for large z).
    return jnp.where(z > 20.0, z, jnp.log1p(jnp.exp(jnp.minimum(z, 20.0))))


def _depth_head_kernel_vpu(w_ref, b_ref, x_ref, o_ref):
    """Small-C path: unrolled VPU weighted sum over channels.

    w_ref: SMEM (C,) f32 ; b_ref: SMEM (1,) f32
    x_ref: VMEM (1, C, THW) ; o_ref: VMEM (1, 1, THW)
    """
    C = x_ref.shape[1]
    thw = x_ref.shape[2]
    x = x_ref[0].astype(jnp.float32)                      # (C, THW)
    z = jnp.full((1, thw), b_ref[0], dtype=jnp.float32)   # init with bias
    for c in range(C):                                    # static unroll
        z = z + w_ref[c] * x[c:c + 1, :]
    o_ref[0] = _softplus(z).astype(o_ref.dtype)


def _depth_head_kernel_mxu(w_ref, b_ref, x_ref, o_ref):
    """Large-C path: (1, C) @ (C, THW) on the MXU, f32 accumulation.

    w_ref: VMEM (1, C) ; b_ref: SMEM (1,) f32
    x_ref: VMEM (1, C, THW) ; o_ref: VMEM (1, 1, THW)
    """
    z = jnp.dot(w_ref[...], x_ref[0], preferred_element_type=jnp.float32)
    z = z + b_ref[0]
    o_ref[0] = _softplus(z).astype(o_ref.dtype)


def depth_predict_head(x_nchw, weight, bias):
    """x_nchw: [B, C, H, W]; weight: [1, C, 1, 1]; bias: [1]."""
    B, C, H, W = x_nchw.shape
    HW = H * W
    dtype = x_nchw.dtype

    # Free view of NCHW: (B, C, H*W). No HBM transpose.
    x3 = x_nchw.reshape(B, C, HW)

    LANE = 128
    hw_pad = ((HW + LANE - 1) // LANE) * LANE
    # Cap the per-buffer x tile at ~4 MiB (so 2x buffers ~8 MiB), lane-multiple.
    bytes_per_col = C * jnp.dtype(dtype).itemsize
    max_tile = max(LANE, ((4 * 1024 * 1024) // max(bytes_per_col, 1)) // LANE * LANE)
    thw = min(hw_pad, max_tile)
    hw_pad = ((hw_pad + thw - 1) // thw) * thw
    if hw_pad != HW:
        x3 = jnp.pad(x3, ((0, 0), (0, 0), (0, hw_pad - HW)))

    grid = (B, hw_pad // thw)
    x_spec = pl.BlockSpec((1, C, thw), lambda b, j: (b, 0, j))
    out_spec = pl.BlockSpec((1, 1, thw), lambda b, j: (b, 0, j))
    smem_spec = pl.BlockSpec(memory_space=pltpu.MemorySpace.SMEM)

    b_flat = bias.reshape(1).astype(jnp.float32)
    use_mxu = (C >= 64) and (C % 8 == 0)
    if use_mxu:
        kernel = _depth_head_kernel_mxu
        in_specs = [pl.BlockSpec((1, C), lambda b, j: (0, 0)), smem_spec, x_spec]
        args = (weight.reshape(1, C).astype(dtype), b_flat, x3)
    else:
        kernel = _depth_head_kernel_vpu
        in_specs = [smem_spec, smem_spec, x_spec]
        args = (weight.reshape(C).astype(jnp.float32), b_flat, x3)

    out = pl.pallas_call(
        kernel,
        out_shape=jax.ShapeDtypeStruct((B, 1, hw_pad), dtype),
        grid=grid,
        in_specs=in_specs,
        out_specs=out_spec,
        compiler_params=pltpu.CompilerParams(
            dimension_semantics=("parallel", "parallel"),
        ),
    )(*args)

    # (B, 1, hw_pad) -> (B, 1, H, W)
    return out[:, :, :HW].reshape(B, 1, H, W)


def _reference(x_nchw, weight, bias):
    w = weight.reshape(-1)                                # (C,)
    z = jnp.einsum("bchw,c->bhw", x_nchw, w) + bias[0]
    z = z[:, None, :, :]
    return jnp.where(z > 20.0, z, jnp.log1p(jnp.exp(jnp.minimum(z, 20.0))))


if __name__ == "__main__":
    B, C, H, W = 2, 4, 16, 16

    key = jax.random.PRNGKey(0)
    kx, kw, kb = jax.random.split(key, 3)

    x = jax.random.normal(kx, (B, C, H, W), dtype=jnp.float32)
    # deterministic synthetic Conv2d(in_channels=C, out_channels=1, k=1) params
    weight = jax.random.normal(kw, (1, C, 1, 1), dtype=jnp.float32) * 0.5
    bias = jax.random.normal(kb, (1,), dtype=jnp.float32) * 0.1

    pred = depth_predict_head(x, weight, bias)
    pred = jax.block_until_ready(pred)

    ref = _reference(x, weight, bias)
    assert pred.shape == (B, 1, H, W), pred.shape
    assert jnp.allclose(pred, ref, atol=1e-5, rtol=1e-5), "mismatch vs reference"

    print("KERNEL_OK")
</pallas_src>

<mosaic_0001>
module attributes {stable_mosaic.version = 11 : i64} {
  func.func @_depth_head_kernel_vpu(%arg0: i32, %arg1: i32, %arg2: memref<4xf32, #tpu.memory_space<smem>>, %arg3: memref<1xf32, #tpu.memory_space<smem>>, %arg4: memref<1x4x256xf32, #tpu.memory_space<vmem>>, %arg5: memref<1x1x256xf32, #tpu.memory_space<vmem>>) attributes {dimension_semantics = [#tpu.dimension_semantics<parallel>, #tpu.dimension_semantics<parallel>], iteration_bounds = array<i64: 2, 1>, scalar_prefetch = 0 : i64, scratch_operands = 0 : i64, tpu.core_type = #tpu.core_type<tc>, window_params = [{transform_indices = @transform_0, window_bounds = array<i64: 4>}, {transform_indices = @transform_1, window_bounds = array<i64: 1>}, {transform_indices = @transform_2, window_bounds = array<i64: 1, 4, 256>}, {transform_indices = @transform_3, window_bounds = array<i64: 1, 1, 256>}]} {
    %c0 = arith.constant 0 : index
    %c0_0 = arith.constant 0 : index
    %c0_1 = arith.constant 0 : index
    %0 = vector.load %arg4[%c0, %c0_0, %c0_1] : memref<1x4x256xf32, #tpu.memory_space<vmem>>, vector<1x4x256xf32>
    %1 = vector.shape_cast %0 : vector<1x4x256xf32> to vector<4x256xf32>
    %c0_2 = arith.constant 0 : index
    %2 = memref.load %arg3[%c0_2] : memref<1xf32, #tpu.memory_space<smem>>
    %3 = vector.broadcast %2 : f32 to vector<1x256xf32>
    %c0_3 = arith.constant 0 : index
    %4 = memref.load %arg2[%c0_3] : memref<4xf32, #tpu.memory_space<smem>>
    %5 = vector.extract_strided_slice %1 {offsets = [0, 0], sizes = [1, 256], strides = [1, 1]} : vector<4x256xf32> to vector<1x256xf32>
    %6 = vector.broadcast %4 : f32 to vector<1x256xf32>
    %7 = arith.mulf %6, %5 : vector<1x256xf32>
    %8 = arith.addf %3, %7 : vector<1x256xf32>
    %c1 = arith.constant 1 : index
    %9 = memref.load %arg2[%c1] : memref<4xf32, #tpu.memory_space<smem>>
    %10 = vector.extract_strided_slice %1 {offsets = [1, 0], sizes = [1, 256], strides = [1, 1]} : vector<4x256xf32> to vector<1x256xf32>
    %11 = vector.broadcast %9 : f32 to vector<1x256xf32>
    %12 = arith.mulf %11, %10 : vector<1x256xf32>
    %13 = arith.addf %8, %12 : vector<1x256xf32>
    %c2 = arith.constant 2 : index
    %14 = memref.load %arg2[%c2] : memref<4xf32, #tpu.memory_space<smem>>
    %15 = vector.extract_strided_slice %1 {offsets = [2, 0], sizes = [1, 256], strides = [1, 1]} : vector<4x256xf32> to vector<1x256xf32>
    %16 = vector.broadcast %14 : f32 to vector<1x256xf32>
    %17 = arith.mulf %16, %15 : vector<1x256xf32>
    %18 = arith.addf %13, %17 : vector<1x256xf32>
    %c3 = arith.constant 3 : index
    %19 = memref.load %arg2[%c3] : memref<4xf32, #tpu.memory_space<smem>>
    %20 = vector.extract_strided_slice %1 {offsets = [3, 0], sizes = [1, 256], strides = [1, 1]} : vector<4x256xf32> to vector<1x256xf32>
    %21 = vector.broadcast %19 : f32 to vector<1x256xf32>
    %22 = arith.mulf %21, %20 : vector<1x256xf32>
    %23 = arith.addf %18, %22 : vector<1x256xf32>
    %cst = arith.constant 2.000000e+01 : f32
    %24 = vector.broadcast %cst : f32 to vector<1x256xf32>
    %25 = arith.cmpf ogt, %23, %24 : vector<1x256xf32>
    %cst_4 = arith.constant 2.000000e+01 : f32
    %26 = vector.broadcast %cst_4 : f32 to vector<1x256xf32>
    %27 = arith.minimumf %23, %26 : vector<1x256xf32>
    %28 = math.exp %27 : vector<1x256xf32>
    %29 = math.log1p %28 : vector<1x256xf32>
    %30 = arith.select %25, %23, %29 : vector<1x256xi1>, vector<1x256xf32>
    %c0_5 = arith.constant 0 : index
    %c0_6 = arith.constant 0 : index
    %c0_7 = arith.constant 0 : index
    %31 = vector.load %arg5[%c0_5, %c0_6, %c0_7] : memref<1x1x256xf32, #tpu.memory_space<vmem>>, vector<1x1x256xf32>
    %32 = vector.shape_cast %31 : vector<1x1x256xf32> to vector<1x256xf32>
    %33 = vector.shape_cast %30 : vector<1x256xf32> to vector<1x1x256xf32>
    tpu.vector_store %arg5[%c0_5, %c0_6, %c0_7], %33 {strides = array<i32>} : memref<1x1x256xf32, #tpu.memory_space<vmem>>, vector<1x1x256xf32>,
    return
  }
  func.func @transform_0(%arg0: i32, %arg1: i32) -> i32 {
    %c0_i32 = arith.constant 0 : i32
    %c0_i32_0 = arith.constant 0 : i32
    return %c0_i32 : i32
  }
  func.func @transform_1(%arg0: i32, %arg1: i32) -> i32 {
    %c0_i32 = arith.constant 0 : i32
    %c0_i32_0 = arith.constant 0 : i32
    return %c0_i32 : i32
  }
  func.func @transform_2(%arg0: i32, %arg1: i32) -> (i32, i32, i32) {
    %c0_i32 = arith.constant 0 : i32
    %c0_i32_0 = arith.constant 0 : i32
    return %arg0, %c0_i32, %arg1 : i32, i32, i32
  }
  func.func @transform_3(%arg0: i32, %arg1: i32) -> (i32, i32, i32) {
    %c0_i32 = arith.constant 0 : i32
    %c0_i32_0 = arith.constant 0 : i32
    return %arg0, %c0_i32, %arg1 : i32, i32, i32
  }
}

</mosaic_0001>

<bundles_post_ra>
// kernel: tpu_custom_call.1
= control target key start
LH: loop header
LB: loop body
LE: loop exit
PB: predicated region body
PF: predicated region fallthrough
CT: control target
= control target key end

     0   :  { %s864_s0 = inlined_call_operand.vmem [shape: f32[4], index: 0, kind: input, shape index: {}]   ;;  %s865_s1 = inlined_call_operand.<no memory space> [shape: f32[1], index: 1, kind: input, shape index: {}]   ;;  %s866_s2 = inlined_call_operand.hbm [shape: f32[2,4,256], index: 2, kind: input, shape index: {}]   ;;  %s867_s3 = inlined_call_operand.hbm [shape: f32[2,1,256], index: 3, kind: output, shape index: {}]  }
   0x1   :  { %8 = sst [smem:[#allocation2]] %s865_s1 }
   0x2   :  { %9 = vsyncpa [#allocation6], 0 }
   0x3   :  { %10 = vsyncpa [#allocation4], 0 }
   0x4   :  { %12 = vsyncpa [#allocation4 + $0x1], 0 }
   0x5   :  { %13 = vsyncpa [#allocation5], 0 }
   0x6   :  { %15 = vsyncpa [#allocation5 + $0x1], 0  ;;  %s664_s14 = smov 0   ;;  %s666_s15 = smov 0  }
   0x7   :  { %s668_s16 = smov 0   ;;  %s670_s17 = smov 0  }
   0x8   :  { %s672_s18 = smov 0   ;;  %s674_s19 = smov 0  }
   0x9 LB: > { %s401_s1 = sadd.s32 4294967295, %s635_s19   ;;  %s402_s20 = sadd.s32 4294967294, %s635_s19   ;;  %s635_s19 = sphi %s674_s19, %s21_s19   ;;  %s631_s18 = sphi %s672_s18, %s889_s18   ;;  %s627_s17 = sphi %s670_s17, %s888_s17   ;;  %s623_s16 = sphi %s668_s16, %s887_s16   ;;  %s619_s15 = sphi %s666_s15, %s886_s15   ;;  %s615_s14 = sphi %s664_s14, %s885_s14  }
   0xa   : > { %p97_p0 = scmp.ne.s32.totalorder %s619_s15, %s615_s14  ;;  %p698_p1 = scmp.eq.s32.totalorder %s401_s1, 0 }
   0xb   : > { %p702_p2 = scmp.eq.s32.totalorder %s401_s1, 1  ;;  %p129_p3 = scmp.eq.s32.totalorder %s402_s20, 1 }
   0xc   : > { %s872_s21 = scalar_select %p698_p1, 1, 0 }
   0xd   : > { %p708_p4 = por %p698_p1, %p97_p0  ;;  %p403_p5 = scmp.ge.s32.totalorder %s635_s19, 1 }
   0xe   : > { %p713_p6 = por %p129_p3, %p97_p0  ;;  %p136_p7 = scmp.lt.s32.totalorder %s635_s19, 3 }
   0xf   : > { %s874_s23 = scalar_select %p708_p4, 1, 0 }
  0x10   : > { %s875_s24 = scalar_select %p713_p6, 1, 0 }
  0x11   : > { %s149_s27 = sshll.u32 %s864_s0, 4  ;;  %p721_p8 = pnand %p403_p5, %p136_p7  ;;  %s150_s27 = int_to_ptr.vmem [resolvable:$true] %s149_s27 }
  0x12   : > { %s33_s30 = sadd.s32 1, %s631_s18  ;;  %s84_s4 = sadd.s32 1, %s623_s16 }
  0x13   : > { %p434_p10 = pneg %p721_p8  ;;  %p35_p12 = scmp.ge.s32.totalorder %s33_s30, 2 }
  0x14   : > { %s504_s5 = scalar_lea.vmem %s150_s27, 16  ;;  %p512_p7 = scmp.lt.s32.totalorder %s150_s27, %s150_s27 }
  0x15   : > { %p730_p11 = pnand %p434_p10, %p698_p1  ;;  %p505_p13 = scmp.ne.s32.totalorder %s150_s27, %s504_s5 }
  0x16   : > { %p513_p6 = scmp.lt.s32.totalorder %s504_s5, %s504_s5 }
  0x17   : > { %p506_p0 = pneg %p730_p11 }
  0x18   : > { %p514_p9 = por %p513_p6, %p512_p7 }
  0x19   : > { %p507_p3 = pnand %p506_p0, %p505_p13 }
  0x1b   : > { %p508_p5 = pneg %p507_p3 }
  0x1d   : > { %p515_p4 = pnand %p514_p9, %p508_p5 }
  0x1f   : > { %518 = shalt.err (!%p515_p4)
}
  0x20   : > { %s637_s6 = smov [#allocation3]   ;;  %s891_s30 = smov (%p35_p12, %s33_s30), 0 }
  0x21   : > { %437 = dma.vmem_to_smem (!%p730_p11), %s150_s27, 16, %s637_s6, [#allocation6]  }
  0x22   : > { %p91_p10 = scmp.ne.s32.totalorder %s623_s16, %s619_s15  ;;  %p92_p6 = scmp.eq.s32.totalorder %s635_s19, 0 }
  0x23   : > { %s79_s7 = ssub.s32 %s631_s18, %s891_s30  ;;  %p447_p4 = scmp.lt.s32.totalorder %s635_s19, 2 }
  0x24   : > { %p82_p9 = scmp.eq.s32.totalorder %s79_s7, 0  ;;  %p93_p13 = por %p92_p6, %p91_p10 }
  0x25   : > { %p750_p0 = por %p702_p2, %p91_p10  ;;  %s163_s9 = sand.u32 1, %s623_s16  }
  0x26   : > { %s756_s10 = scalar_select %p82_p9, %s623_s16, %s84_s4  }
  0x27   : > { %s878_s8 = scalar_select %p750_p0, 1, 0 }
  0x28   : > { %s406_s11 = sshll.u32 %s163_s9, 3  ;;  %s424_s12 = sshll.u32 %s631_s18, 7 }
  0x29   : > { %s762_s20 = scalar_lea.hbm %s866_s2, %s424_s12  ;;  %s167_s25 = scalar_lea.vmem [#allocation7], %s406_s11 }
  0x2a   : > { %s177_s22 = sshll.u32 %s167_s25, 4  ;;  %p766_p2 = pnand %p447_p4, %p93_p13  ;;  %s764_s22 = int_to_ptr.vmem [resolvable:$true] %s177_s22 }
  0x2b   : > { %s164_s27 = scalar_lea.sflag [#allocation4], %s163_s9  ;;  %s519_s29 = scalar_lea.hbm %s762_s20, 128 }
  0x2c   : > { %p520_p11 = scmp.ne.s32.totalorder %s762_s20, %s519_s29  ;;  %p521_p12 = pneg %p766_p2 }
  0x2d   : > { %s524_s6 = scalar_lea.hbm %s866_s2, 256  ;;  %p525_p7 = scmp.lt.u32.totalorder %s762_s20, %s866_s2 }
  0x2e   : > { %p522_p3 = pnand %p521_p12, %p520_p11  ;;  %p526_p10 = scmp.lt.u32.totalorder %s524_s6, %s519_s29 }
  0x2f   : > { %p528_p4 = scmp.lt.u32.totalorder %s519_s29, %s762_s20 }
  0x30   : > { %p523_p5 = pneg %p522_p3  ;;  %p527_p6 = por %p526_p10, %p525_p7 }
  0x32   : > { %p529_p9 = por %p528_p4, %p527_p6 }
  0x34   : > { %p530_p13 = pnand %p529_p9, %p523_p5 }
  0x36   : > { %533 = shalt.err (!%p530_p13)
}
  0x37   : > { %s534_s9 = scalar_lea.vmem %s764_s22, 128  ;;  %s638_s12 = smov [#allocation7]  }
  0x38   : > { %p535_p11 = scmp.ne.s32.totalorder %s764_s22, %s534_s9  ;;  %s539_s13 = sshll.u32 %s638_s12, 4  ;;  %s540_s13 = int_to_ptr.vmem [resolvable:$false] %s539_s13 }
  0x39   : > { %s541_s1 = scalar_lea.vmem %s540_s13, 256  ;;  %p542_p1 = scmp.lt.s32.totalorder %s764_s22, %s540_s13 }
  0x3a   : > { %p537_p3 = pnand %p535_p11, %p521_p12  ;;  %p543_p7 = scmp.lt.s32.totalorder %s541_s1, %s534_s9 }
  0x3c   : > { %p538_p0 = pneg %p537_p3  ;;  %p544_p10 = por %p543_p7, %p542_p1 }
  0x3e   : > { %p545_p6 = pnand %p544_p10, %p538_p0 }
  0x40   : > { %548 = shalt.err (!%p545_p6)
}
  0x41   : > { %441 = dma.hbm_to_vmem [thread:$0]  (!%p766_p2), %s762_s20, 128, %s764_s22, %s164_s27  }
  0x42   : > { %186 = sbr.rel (%p721_p8) target bundleno = 148 (0x94), region = 32  ;;  %p880_p12 = scmp.ne.s32.totalorder (!%p721_p8), %s872_s21, 0 }
  0x49   : > { %602 = dma.done.wait (%p880_p12), [#allocation6], 16  }
  0x4a   : > { %604 = vsyncadd (%p880_p12), [#allocation6], 4294967280  ;;  %s802_s25 = sand.u32 1, %s619_s15   ;;  %p881_p1 = scmp.ne.s32.totalorder %s874_s23, 0 }
  0x4b   : > { %s411_s29 = sshll.u32 %s802_s25, 3  ;;  %s193_s26 = scalar_lea.sflag [#allocation4], %s802_s25 }
  0x4c   : > { %s196_s4 = scalar_lea.vmem [#allocation7], %s411_s29 }
  0x4d   : > { %606 = dma.done.wait (%p881_p1), %s193_s26, 128  }
  0x4e   : > { %608 = vsyncadd (%p881_p1), %s193_s26, 4294967168 }
  0x4f   : > { %201 = sfence }
  0x50   : > { %s223_s28 = sld [smem:[#allocation2]]  ;;  %s413_s22 = sld [smem:[#allocation3 + $0x1]]  ;;  %v222_v0 = vld [vmem:[%s196_s4] sm:$0xff]  ;;  %v639_v22 = vmov 1966171168   ;;  %v271_v24 = vlaneseq }
  0x51   : > { %s225_s20 = sld [smem:[#allocation3]]  ;;  %s415_s21 = sld [smem:[#allocation3 + $0x2]]  ;;  %v269_v23 = vunpack.c.l.s4 %v639_v22 }
  0x52   : > { %s417_s27 = sld [smem:[#allocation3 + $0x3]]  ;;  %s412_s23 = sshll.u32 %s802_s25, 1  ;;  %v272_v28 = vshrl.u32 %v271_v24, 7  ;;  %vm285_vm2 = vcmp.lt.s32.totalorder %v271_v24, 256 }
  0x53   : > { %v270_v27 = vunpack.c.0.s8 %v269_v23  ;;  %s219_s5 = scalar_lea.vmem [#allocation8], %s412_s23  ;;  %s425_s7 = sshll.u32 %s627_s17, 5 }
  0x54   : > { %s305_s6 = sshll.u32 %s219_s5, 4  ;;  %s817_s12 = scalar_lea.hbm %s867_s3, %s425_s7  ;;  %s812_s6 = int_to_ptr.vmem [resolvable:$true] %s305_s6 }
  0x55   : > { %v273_v32 = vsub.s32 %v270_v27, %v272_v28  ;;  %s289_s13 = scalar_lea.sflag [#allocation5], %s802_s25  ;;  %s549_s1 = scalar_lea.vmem %s812_s6, 32 }
  0x56   : > { %v224_v1 = vstv %s223_s28  ;;  %v230_v4 = vstv %s413_s22  ;;  %p550_p8 = scmp.ne.s32.totalorder %s812_s6, %s549_s1  ;;  %p882_p0 = scmp.ne.s32.totalorder %s878_s8, 0 }
  0x57   : > { %v226_v2 = vstv %s225_s20  ;;  %v238_v5 = vstv %s415_s21  ;;  %v231_v6 = vmul.f32 %v230_v4, %v222_v0  ;;  %s640_s17 = smov [#allocation8]  }
  0x58   : > { %v227_v3 = vmul.f32 %v226_v2, %v222_v0  ;;  %v239_v7 = vmul.f32 %v238_v5, %v222_v0  ;;  %v246_v8 = vstv %s417_s27  ;;  %p551_p2 = pnand %p550_p8, %p882_p0  ;;  %s553_s29 = sshll.u32 %s640_s17, 4  ;;  %s554_s29 = int_to_ptr.vmem [resolvable:$false] %s553_s29 }
  0x59   : > { %v247_v10 = vmul.f32 %v246_v8, %v222_v0  ;;  %v414_v11 = vrot.slane %v231_v6, 9  ;;  %s555_s26 = scalar_lea.vmem %s554_s29, 64  ;;  %p556_p4 = scmp.lt.s32.totalorder %s812_s6, %s554_s29 }
  0x5a   : > { %v228_v9 = vadd.f32 %v227_v3, %v224_v1  ;;  %v416_v12 = vrot.slane %v239_v7, 10  ;;  %p552_p5 = pneg %p551_p2  ;;  %p557_p9 = scmp.lt.s32.totalorder %s555_s26, %s549_s1 }
  0x5b   : > { %v418_v14 = vrot.slane %v247_v10, 11 }
  0x5c   : > { %v236_v13 = vadd.f32 %v414_v11, %v228_v9  ;;  %p558_p13 = por %p557_p9, %p556_p4 }
  0x5e   : > { %v244_v15 = vadd.f32 %v416_v12, %v236_v13  ;;  %p559_p11 = pnand %p558_p13, %p552_p5 }
  0x60   : > { %v252_v16 = vadd.f32 %v418_v14, %v244_v15 }
  0x62   : > { %v254_v17 = vmin.f32 %v252_v16, 20.0  ;;  %vm253_vm1 = vcmp.gt.f32.partialorder %v252_v16, 20.0 }
  0x64   : > { %v255_v18 = vmul.f32 1.442695, %v254_v17 }
  0x66   : > { %500 = vpow2.f32 %v255_v18 }
  0x70   : > { %v501_v19 = vpop.eup %500 }
  0x71   : > { %v257_v20 = vadd.f32 1.0, %v501_v19  ;;  %v260_v21 = vmul.f32 -0.5, %v501_v19  ;;  %v263_v26 = vand.u32 2147483647, %v501_v19 }
  0x73   : > { %502 = vlog2.f32 %v257_v20  ;;  %v261_v25 = vadd.f32 1.0, %v260_v21  ;;  %vm264_vm0 = vcmp.lt.f32.partialorder %v263_v26, 0.0004427343 }
  0x75   : > { %v262_v29 = vmul.f32 %v501_v19, %v261_v25 }
  0x7d   : > { %v503_v30 = vpop.eup %502 }
  0x7e   : > { %v259_v31 = vmul.f32 0.6931472, %v503_v30 }
  0x80   : > { %v265_v33 = vsel %vm264_vm0, %v262_v29, %v259_v31 }
  0x81   : > { %v266_v34 = vsel %vm253_vm1, %v252_v16, %v265_v33 }
  0x82   : > { %v274_v35 = vrot.slane %v266_v34, %v273_v32 }
  0x84   : > { %v281_v36 = vrot.slane %v274_v35, %v273_v32 }
  0x86   : > { %287 = vst.msk [vmem:[%s219_s5] sm:$0x3] %vm285_vm2, %v281_v36 }
  0x87   : > { %562 = shalt.err (!%p559_p11)
}
  0x88   : > { %s563_s25 = scalar_lea.hbm %s817_s12, 32  ;;  %s567_s20 = scalar_lea.hbm %s867_s3, 64 }
  0x89   : > { %p564_p3 = scmp.ne.s32.totalorder %s817_s12, %s563_s25  ;;  %p568_p6 = scmp.lt.u32.totalorder %s817_s12, %s867_s3 }
  0x8a   : > { %p569_p12 = scmp.lt.u32.totalorder %s567_s20, %s563_s25  ;;  %p571_p8 = scmp.lt.u32.totalorder %s563_s25, %s817_s12 }
  0x8b   : > { %p565_p7 = pnand %p564_p3, %p882_p0 }
  0x8c   : > { %p570_p1 = por %p569_p12, %p568_p6 }
  0x8d   : > { %p566_p10 = pneg %p565_p7 }
  0x8e   : > { %p572_p2 = por %p571_p8, %p570_p1 }
  0x90   : > { %p573_p5 = pnand %p572_p2, %p566_p10 }
  0x92   : > { %576 = shalt.err (!%p573_p5)
}
  0x93   : > { %432 = dma.vmem_to_hbm [thread:$0]  (%p882_p0), %s812_s6, 32, %s817_s12, %s289_s13  }
  0x94 PF: > { %s317_s27 = sand.u32 1, %s615_s14   ;;  %p883_p4 = scmp.ne.s32.totalorder %s875_s24, 0 }
  0x95   : > { %p884_p9 = scmp.ge.s32.totalorder %s635_s19, 2  ;;  %s318_s23 = scalar_lea.sflag [#allocation5], %s317_s27 }
  0x97   : > { %p443_p13 = pnand %p884_p9, %p883_p4 }
  0x99   : > { %610 = dma.done.wait (!%p443_p13), %s318_s23, 32  }
  0x9a   : > { %612 = vsyncadd (!%p443_p13), %s318_s23, 4294967264  ;;  %s21_s19 = sadd.s32 1, %s635_s19   ;;  %s885_s14 = smov %s619_s15 }
  0x9b   : > { %p18_p11 = scmp.ge.s32.totalorder %s21_s19, 4   ;;  %s886_s15 = smov %s623_s16 }
  0x9c   : > { %s887_s16 = smov %s756_s10  ;;  %s888_s17 = smov %s631_s18 }
  0x9d   : > { %s889_s18 = smov %s891_s30  ;;  %20 = sbr.rel (!%p18_p11) target bundleno = 9 (0x9), region = 82 }
  0xa4   :  { %323 = vsyncpa [#allocation4], 1 }
  0xa5   :  { %325 = vsyncpa [#allocation4 + $0x1], 1 }
  0xa6   :  { %326 = vsyncpa [#allocation5], 1 }
  0xa7   :  { %328 = vsyncpa [#allocation5 + $0x1], 1 }
  0xa8   :  { %329 = vsyncpa [#allocation6], 1 }
  0xa9   :  { %331 = vsyncpa [#allocation6 + $0x1], 1 }

</bundles_post_ra>
